<compile_context>
chip_gen: v6e
topology: v6e:2x2x1
jax: 0.10.0
libtpu: 0.0.40
codegen_flags: <defaults>
</compile_context>

<pallas_src>
import math

import jax
import jax.numpy as jnp
import numpy as np
from jax import lax
from jax.experimental import pallas as pl
from jax.experimental.pallas import tpu as pltpu


def _round_up(x: int, m: int) -> int:
    return ((x + m - 1) // m) * m


def _adaptive_pool_matrix(w: int, l: int) -> np.ndarray:
    """Row-pooling matrix P (l, w) reproducing torch adaptive_avg_pool2d on the H axis."""
    P = np.zeros((l, w), dtype=np.float32)
    for i in range(l):
        start = (i * w) // l
        end = math.ceil((i + 1) * w / l)
        P[i, start:end] = 1.0 / (end - start)
    return P


def pyramid_features(features: jax.Array, layers, *, tk_max: int = 2048,
                     return_parts: bool = False) -> jax.Array:
    """PyramidFeatures.forward: (B, W, C) -> (B, W + sum(layers), C)."""
    b, w, c = features.shape
    in_dtype = features.dtype
    layers = tuple(int(l) for l in layers)
    l_sum = sum(layers)
    if l_sum == 0:
        return features

    # Stream X in its native dtype (bf16 halves HBM read bytes); exotic dtypes
    # fall back to f32.  Accumulation is always f32 (preferred_element_type).
    if in_dtype in (jnp.bfloat16, jnp.float32):
        compute_dtype = in_dtype
        x = features
    else:
        compute_dtype = jnp.float32
        x = features.astype(jnp.float32)
    itemsize = int(np.dtype(compute_dtype).itemsize)

    l_pad = _round_up(l_sum, 8)          # sublane-aligned pooled rows (keep M small)
    c_lanes = _round_up(c, 128)          # VMEM lane footprint of a C row

    # ---- VMEM-capacity-aware K tiling --------------------------------------
    try:
        vmem_cap = int(pltpu.get_tpu_info().vmem_capacity_bytes)
    except Exception:                    # pragma: no cover - conservative fallback
        vmem_cap = 64 << 20
    # v5e/v6e (128 MiB VMEM): ~8 MiB X tiles; v7x (64 MiB): ~4 MiB X tiles.
    target_x_tile = (8 << 20) if vmem_cap >= (96 << 20) else (4 << 20)
    tk_cap = max(128, min(tk_max, (target_x_tile // (c_lanes * itemsize)) // 128 * 128))
    if w <= tk_cap:
        tk, num_k = w, 1                 # full-K in one step, no padding at all
    else:
        tk = tk_cap                      # multiple of 128
        num_k = -(-w // tk)
    needs_mask = (num_k > 1) and (w % tk != 0)   # tail tile reads past W -> mask
    p_w = tk * num_k                     # P width covers every K chunk exactly

    # Pooling matrix P (host-built glue, tiny).  Columns beyond W are zero.
    p_np = np.zeros((l_pad, p_w), dtype=np.float32)
    row = 0
    for l in layers:
        p_np[row:row + l, :w] = _adaptive_pool_matrix(w, l)
        row += l
    p = jnp.asarray(p_np, dtype=compute_dtype)

    # ---- Kernel: pooled(b) += P[:, k-chunk] @ X[b, k-chunk, :] --------------
    def kernel(p_ref, x_ref, o_ref):
        k = pl.program_id(1)
        xt = x_ref[...]                                    # (tk, C), native dtype
        if needs_mask:
            rows = lax.broadcasted_iota(jnp.int32, xt.shape, 0)
            xt = jnp.where(rows < (w - k * tk), xt, jnp.zeros_like(xt))
        if num_k == 1:
            pt = p_ref[...]
        else:
            start = pl.multiple_of(k * tk, tk)             # aligned lane slice of resident P
            pt = p_ref[:, pl.ds(start, tk)]
        part = jnp.dot(pt, xt, preferred_element_type=jnp.float32)
        if num_k == 1:
            o_ref[...] = part
        else:
            @pl.when(k == 0)
            def _():
                o_ref[...] = jnp.zeros_like(o_ref)
            o_ref[...] += part                             # accumulate directly in f32 output

    # ---- Specs --------------------------------------------------------------
    x_block = (None, tk, c)                                # batch dim squeezed in-kernel
    x_index = lambda bi, ki: (bi, ki, 0)
    buf_count = 2
    if num_k >= 3:
        try:
            x_spec = pl.BlockSpec(x_block, x_index, pipeline_mode=pl.Buffered(3))
            buf_count = 3
        except (TypeError, AttributeError):                # older API: plain double buffer
            x_spec = pl.BlockSpec(x_block, x_index)
    else:
        x_spec = pl.BlockSpec(x_block, x_index)

    x_tile_bytes = tk * c_lanes * itemsize
    p_bytes = l_pad * _round_up(p_w, 128) * itemsize
    o_tile_bytes = l_pad * c_lanes * 4
    need = buf_count * x_tile_bytes + p_bytes + 2 * o_tile_bytes + (1 << 20)
    vmem_limit = int(min(max(2 * need, 16 << 20), int(0.7 * vmem_cap)))

    cost = pl.CostEstimate(                                # true (unpadded) dims
        flops=2 * l_sum * w * b * c,
        transcendentals=0,
        bytes_accessed=b * w * c * itemsize + l_sum * w * itemsize + b * l_sum * c * 4,
    )

    pooled = pl.pallas_call(
        kernel,
        out_shape=jax.ShapeDtypeStruct((b, l_pad, c), jnp.float32),
        grid_spec=pltpu.PrefetchScalarGridSpec(
            num_scalar_prefetch=0,
            grid=(b, num_k),                               # reduction axis last
            in_specs=[
                pl.BlockSpec((l_pad, p_w), lambda bi, ki: (0, 0)),   # P: resident, DMA'd once
                x_spec,
            ],
            out_specs=pl.BlockSpec((None, l_pad, c), lambda bi, ki: (bi, 0, 0)),
        ),
        compiler_params=pltpu.CompilerParams(
            dimension_semantics=("parallel", "arbitrary"),
            vmem_limit_bytes=vmem_limit,
        ),
        cost_estimate=cost,
    )(p, x)

    pooled = pooled[:, :l_sum, :].astype(in_dtype)
    if return_parts:
        # Avoids re-streaming the whole (B, W, C) features just to concatenate.
        return features, pooled
    # Identity block of the PyTorch op: exact copy, kept for module semantics.
    return jnp.concatenate([features, pooled], axis=1)


# ---------------------------------------------------------------------------
# Pure-JAX reference (mirrors the PyTorch forward) for correctness checks.
# ---------------------------------------------------------------------------
def pyramid_features_ref(features: jax.Array, layers) -> jax.Array:
    b, w, c = features.shape
    pieces = [features]
    f32 = features.astype(jnp.float32)
    for l in layers:
        P = jnp.asarray(_adaptive_pool_matrix(w, l))       # (l, w)
        pooled = jnp.einsum("lw,bwc->blc", P, f32)
        pieces.append(pooled.astype(features.dtype))
    return jnp.concatenate(pieces, axis=1)


if __name__ == "__main__":
    key = jax.random.PRNGKey(0)
    k1, k2, k3 = jax.random.split(key, 3)

    # 1) Small single-K-tile f32 case (b=batch, w=sequence length, c=channels).
    B, W, C = 2, 16, 32
    layers1 = (1, 2, 4)
    x1 = jax.random.normal(k1, (B, W, C), dtype=jnp.float32)
    out1 = jax.block_until_ready(pyramid_features(x1, layers1))
    ref1 = pyramid_features_ref(x1, layers1)
    assert out1.shape == (B, W + sum(layers1), C), out1.shape
    np.testing.assert_allclose(np.asarray(out1), np.asarray(ref1), rtol=1e-5, atol=1e-5)

    # 2) Multi-K-tile path: K accumulation into the resident output block,
    #    in-kernel tail masking (no HBM padding), resident P, 3-deep X pipeline.
    B2, W2, C2 = 2, 800, 40
    layers2 = (2, 5)
    x2 = jax.random.normal(k2, (B2, W2, C2), dtype=jnp.float32)
    out2 = jax.block_until_ready(pyramid_features(x2, layers2, tk_max=256))
    ref2 = pyramid_features_ref(x2, layers2)
    assert out2.shape == (B2, W2 + sum(layers2), C2), out2.shape
    np.testing.assert_allclose(np.asarray(out2), np.asarray(ref2), rtol=1e-4, atol=1e-4)

    # 3) bf16 streaming path at AlignHead-like shapes (frames=15, out_channels=128):
    #    X stays bf16 end-to-end through HBM, f32 MXU accumulation.
    B3, W3, C3 = 2, 15, 128
    layers3 = (1, 3, 5)
    x3 = jax.random.normal(k3, (B3, W3, C3), dtype=jnp.bfloat16)
    out3 = jax.block_until_ready(pyramid_features(x3, layers3))
    ref3 = pyramid_features_ref(x3, layers3)
    assert out3.shape == (B3, W3 + sum(layers3), C3), out3.shape
    np.testing.assert_allclose(np.asarray(out3, dtype=np.float32),
                               np.asarray(ref3, dtype=np.float32), rtol=3e-2, atol=3e-2)

    # TODO(synk): the rest of AlignHead (1x1 conv, BiLSTM, MultiheadAttention,
    # bilinear char-embedding interpolation, CTC / SmoothL1 losses) is left to
    # standard JAX/XLA ops, not Pallas.
    print("KERNEL_OK")
</pallas_src>

<mosaic_0001>
module attributes {stable_mosaic.version = 11 : i64} {
  func.func @kernel(%arg0: i32, %arg1: i32, %arg2: memref<8x16xf32, #tpu.memory_space<vmem>>, %arg3: memref<1x16x32xf32, #tpu.memory_space<vmem>>, %arg4: memref<1x8x32xf32, #tpu.memory_space<vmem>>) attributes {dimension_semantics = [#tpu.dimension_semantics<parallel>, #tpu.dimension_semantics<arbitrary>], iteration_bounds = array<i64: 2, 1>, scalar_prefetch = 0 : i64, scratch_operands = 0 : i64, tpu.core_type = #tpu.core_type<tc>, window_params = [{pipeline_mode = #tpu.pipeline_mode<synchronous>, transform_indices = @transform_0, window_bounds = array<i64: 8, 16>}, {transform_indices = @transform_1, window_bounds = array<i64: 1, 16, 32>}, {transform_indices = @transform_2, window_bounds = array<i64: 1, 8, 32>}]} {
    %c0 = arith.constant 0 : index
    %c0_0 = arith.constant 0 : index
    %c0_1 = arith.constant 0 : index
    %0 = vector.load %arg3[%c0, %c0_0, %c0_1] : memref<1x16x32xf32, #tpu.memory_space<vmem>>, vector<1x16x32xf32>
    %1 = vector.shape_cast %0 : vector<1x16x32xf32> to vector<16x32xf32>
    %c0_2 = arith.constant 0 : index
    %c0_3 = arith.constant 0 : index
    %2 = vector.load %arg2[%c0_2, %c0_3] : memref<8x16xf32, #tpu.memory_space<vmem>>, vector<8x16xf32>
    %cst = arith.constant dense<0.000000e+00> : vector<8x32xf32>
    %3 = tpu.matmul %2, %1, %cst {dimension_numbers = #tpu.dot_dimension_numbers<[1], [0], [0], [1], [0, 0, 1, 1], [], []>} : vector<8x16xf32>, vector<16x32xf32>, vector<8x32xf32> -> vector<8x32xf32>
    %c0_4 = arith.constant 0 : index
    %c0_5 = arith.constant 0 : index
    %c0_6 = arith.constant 0 : index
    %4 = vector.load %arg4[%c0_4, %c0_5, %c0_6] : memref<1x8x32xf32, #tpu.memory_space<vmem>>, vector<1x8x32xf32>
    %5 = vector.shape_cast %4 : vector<1x8x32xf32> to vector<8x32xf32>
    %6 = vector.shape_cast %3 : vector<8x32xf32> to vector<1x8x32xf32>
    tpu.vector_store %arg4[%c0_4, %c0_5, %c0_6], %6 {strides = array<i32>} : memref<1x8x32xf32, #tpu.memory_space<vmem>>, vector<1x8x32xf32>,
    return
  }
  func.func @transform_0(%arg0: i32, %arg1: i32) -> (i32, i32) {
    %c0_i32 = arith.constant 0 : i32
    %c0_i32_0 = arith.constant 0 : i32
    %c0_i32_1 = arith.constant 0 : i32
    return %c0_i32, %c0_i32_0 : i32, i32
  }
  func.func @transform_1(%arg0: i32, %arg1: i32) -> (i32, i32, i32) {
    %c0_i32 = arith.constant 0 : i32
    %c0_i32_0 = arith.constant 0 : i32
    return %arg0, %arg1, %c0_i32 : i32, i32, i32
  }
  func.func @transform_2(%arg0: i32, %arg1: i32) -> (i32, i32, i32) {
    %c0_i32 = arith.constant 0 : i32
    %c0_i32_0 = arith.constant 0 : i32
    %c0_i32_1 = arith.constant 0 : i32
    return %arg0, %c0_i32, %c0_i32_0 : i32, i32, i32
  }
}

</mosaic_0001>

<bundles_post_ra>
// kernel: tpu_custom_call.1
= control target key start
LH: loop header
LB: loop body
LE: loop exit
PB: predicated region body
PF: predicated region fallthrough
CT: control target
= control target key end

     0   :  { %7 = vsyncpa [#allocation3], 0  ;;  %s818_s0 = inlined_call_operand.hbm [shape: f32[8,16], index: 0, kind: input, shape index: {}]   ;;  %s819_s1 = inlined_call_operand.hbm [shape: f32[2,16,32], index: 1, kind: input, shape index: {}]   ;;  %s820_s2 = inlined_call_operand.hbm [shape: f32[2,8,32], index: 2, kind: output, shape index: {}]  }
   0x1   :  { %8 = vsyncpa [#allocation6], 0 }
   0x2   :  { %10 = vsyncpa [#allocation6 + $0x1], 0 }
   0x3   :  { %11 = vsyncpa [#allocation4], 0 }
   0x4   :  { %13 = vsyncpa [#allocation4 + $0x1], 0  ;;  %s642_s9 = smov 0   ;;  %s644_s10 = smov 0  }
   0x5   :  { %s646_s11 = smov 0   ;;  %s648_s12 = smov 0  }
   0x6   :  { %s650_s13 = smov 0   ;;  %s652_s14 = smov 0  }
   0x7 LB: > { %s375_s15 = sadd.s32 4294967295, %s618_s14   ;;  %s376_s16 = sadd.s32 4294967294, %s618_s14   ;;  %s618_s14 = sphi %s652_s14, %s19_s14   ;;  %s614_s13 = sphi %s650_s13, %s839_s13   ;;  %s610_s12 = sphi %s648_s12, %s838_s12   ;;  %s606_s11 = sphi %s646_s11, %s837_s11   ;;  %s602_s10 = sphi %s644_s10, %s836_s10   ;;  %s598_s9 = sphi %s642_s9, %s835_s9  }
   0x8   : > { %s61_s17 = sadd.s32 1, %s606_s11  ;;  %p68_p0 = scmp.ne.s32.totalorder %s606_s11, %s602_s10 }
   0x9   : > { %p69_p1 = scmp.eq.s32.totalorder %s618_s14, 0  ;;  %p74_p2 = scmp.ne.s32.totalorder %s602_s10, %s598_s9 }
   0xa   : > { %p680_p3 = scmp.eq.s32.totalorder %s375_s15, 0  ;;  %p98_p4 = scmp.eq.s32.totalorder %s375_s15, 1 }
   0xb   : > { %p684_p5 = por %p69_p1, %p68_p0  ;;  %p104_p6 = scmp.eq.s32.totalorder %s376_s16, 1 }
   0xc   : > { %p690_p7 = por %p680_p3, %p74_p2  ;;  %p694_p8 = por %p98_p4, %p68_p0 }
   0xd   : > { %p698_p9 = por %p104_p6, %p74_p2  ;;  %p377_p10 = scmp.ge.s32.totalorder %s618_s14, 1 }
   0xe   : > { %s825_s20 = scalar_select %p690_p7, 1, 0 }
   0xf   : > { %s826_s21 = scalar_select %p694_p8, 1, 0 }
  0x10   : > { %s827_s22 = scalar_select %p698_p9, 1, 0 }
  0x11   : > { %p111_p11 = scmp.lt.s32.totalorder %s618_s14, 3  ;;  %s620_s24 = smov [#allocation2]  }
  0x12   : > { %s124_s25 = sshll.u32 %s620_s24, 4  ;;  %p424_p1 = scmp.lt.s32.totalorder %s618_s14, 2  ;;  %s125_s25 = int_to_ptr.vmem [resolvable:$true] %s124_s25 }
  0x13   : > { %p705_p13 = pnand %p377_p10, %p111_p11  ;;  %s31_s28 = sadd.s32 1, %s614_s13 }
  0x14   : > { %p714_p4 = pnand %p424_p1, %p684_p5  ;;  %p33_p6 = scmp.ge.s32.totalorder %s31_s28, 2 }
  0x15   : > { %p411_p0 = pneg %p705_p13  ;;  %s135_s29 = sand.u32 1, %s606_s11  }
  0x16   : > { %s491_s30 = scalar_lea.vmem %s125_s25, 128  ;;  %p499_p8 = scmp.lt.s32.totalorder %s125_s25, %s125_s25 }
  0x17   : > { %p720_p2 = pnand %p411_p0, %p680_p3  ;;  %p492_p11 = scmp.ne.s32.totalorder %s125_s25, %s491_s30 }
  0x18   : > { %p500_p5 = scmp.lt.s32.totalorder %s491_s30, %s491_s30 }
  0x19   : > { %p482_p10 = pneg %p720_p2 }
  0x1a   : > { %p501_p1 = por %p500_p5, %p499_p8 }
  0x1b   : > { %p494_p12 = pnand %p492_p11, %p482_p10 }
  0x1d   : > { %p495_p9 = pneg %p494_p12 }
  0x1f   : > { %p502_p7 = pnand %p501_p1, %p495_p9 }
  0x21   : > { %505 = shalt.err (!%p502_p7)
}
  0x22   : > { %414 = dma.hbm_to_vmem [thread:$0]  (!%p720_p2), %s818_s0, 128, %s125_s25, [#allocation3]  }
  0x23   : > { %s841_s28 = smov (%p33_p6, %s31_s28), 0  ;;  %s380_s5 = sshll.u32 %s135_s29, 4 }
  0x24   : > { %s56_s6 = ssub.s32 %s614_s13, %s841_s28  ;;  %s392_s7 = sshll.u32 %s614_s13, 8 }
  0x25   : > { %p59_p12 = scmp.eq.s32.totalorder %s56_s6, 0  ;;  %s147_s16 = scalar_lea.hbm %s819_s1, %s392_s7 }
  0x26   : > { %s139_s19 = scalar_lea.vmem [#allocation5], %s380_s5  ;;  %s136_s30 = scalar_lea.sflag [#allocation6], %s135_s29 }
  0x27   : > { %s148_s24 = sshll.u32 %s139_s19, 4  ;;  %p508_p7 = pneg %p714_p4  ;;  %s149_s24 = int_to_ptr.vmem [resolvable:$true] %s148_s24 }
  0x28   : > { %s744_s27 = scalar_select %p59_p12, %s606_s11, %s61_s17  }
  0x29   : > { %s519_s25 = scalar_lea.vmem %s149_s24, 256  ;;  %s621_s3 = smov [#allocation5]  }
  0x2a   : > { %p520_p8 = scmp.ne.s32.totalorder %s149_s24, %s519_s25  ;;  %s524_s4 = sshll.u32 %s621_s3, 4  ;;  %s525_s4 = int_to_ptr.vmem [resolvable:$false] %s524_s4 }
  0x2b   : > { %s526_s6 = scalar_lea.vmem %s525_s4, 512  ;;  %p527_p2 = scmp.lt.s32.totalorder %s149_s24, %s525_s4 }
  0x2c   : > { %p522_p9 = pnand %p520_p8, %p508_p7  ;;  %p528_p6 = scmp.lt.s32.totalorder %s526_s6, %s519_s25 }
  0x2e   : > { %p523_p0 = pneg %p522_p9  ;;  %p529_p10 = por %p528_p6, %p527_p2 }
  0x30   : > { %p530_p11 = pnand %p529_p10, %p523_p0 }
  0x32   : > { %533 = shalt.err (!%p530_p11)
}
  0x33   : > { %s622_s5 = smov 128   ;;  %s623_s17 = smov 8  }
  0x34   : > { %418 = dma.hbm_to_vmem [thread:$0]  (!%p714_p4), %s147_s16, 256, %s149_s24, %s136_s30, %s622_s5, %s622_s5, %s623_s17  }
  0x35   : > { %160 = sbr.rel (%p705_p13) target bundleno = 275 (0x113), region = 28 }
  0x3a   : > { %585 = dma.done.wait (%p680_p3), [#allocation3], 128  }
  0x3b   : > { %587 = vsyncadd (%p680_p3), [#allocation3], 4294967168  ;;  %s757_s29 = sand.u32 1, %s602_s10   ;;  %p831_p5 = scmp.ne.s32.totalorder %s825_s20, 0 }
  0x3c   : > { %s385_s7 = sshll.u32 %s757_s29, 4  ;;  %s167_s8 = scalar_lea.sflag [#allocation6], %s757_s29 }
  0x3d   : > { %s170_s15 = scalar_lea.vmem [#allocation5], %s385_s7 }
  0x3e   : > { %589 = dma.done.wait (%p831_p5), %s167_s8, 256  }
  0x3f   : > { %591 = vsyncadd (%p831_p5), %s167_s8, 4294967040  ;;  %v624_v0 = vmov 0.0   ;;  %vm625_vm0 = vmmov 0   ;;  %v193_v1 = vld [vmem:[%s170_s15 + $0x8] sm:$0xff]  ;;  %v192_v2 = vld [vmem:[%s170_s15] sm:$0xff]  ;;  %vm195_vm1 = vcmask 130048  }
  0x40   : > { %396 = vmatprep.subr.mxu0 %v624_v0  ;;  %400 = vmatprep.mubr.msk.f32.mxu0 %vm625_vm0, %v624_v0  ;;  %v194_v3 = vld [vmem:[#allocation2] sm:$0xff]  ;;  %s386_s18 = sshll.u32 %s757_s29, 3  ;;  %s389_s23 = sshll.u32 %s610_s12, 7  ;;  %vm269_vm2 = vcmask 261120  }
  0x41   : > { %397 = vmatpush3.msra.mxu0 %v193_v1  ;;  %s190_s20 = scalar_lea.vmem [#allocation7], %s386_s18  ;;  %s770_s24 = scalar_lea.hbm %s820_s2, %s389_s23 }
  0x42   : > { %398 = vmatprep.subr.mxu0 %v624_v0  ;;  %s285_s26 = sshll.u32 %s190_s20, 4  ;;  %s272_s30 = scalar_lea.sflag [#allocation4], %s757_s29  ;;  %s772_s26 = int_to_ptr.vmem [resolvable:$true] %s285_s26 }
  0x43   : > { %399 = vmatpush3.msra.mxu0 %v192_v2  ;;  %s534_s25 = scalar_lea.vmem %s772_s26, 128  ;;  %p832_p13 = scmp.ne.s32.totalorder %s826_s21, 0 }
  0x44   : > { %401 = vmatmul.mubr.msk.f32.vlgmr.msra.gmra.mxu0 %vm195_vm1, %v194_v3  ;;  %p535_p3 = scmp.ne.s32.totalorder %s772_s26, %s534_s25  ;;  %s626_s12 = smov [#allocation7]  }
  0x45   : > { %s538_s3 = sshll.u32 %s626_s12, 4  ;;  %s539_s3 = int_to_ptr.vmem [resolvable:$false] %s538_s3 }
  0x46   : > { %p536_p4 = pnand %p535_p3, %p832_p13  ;;  %s540_s4 = scalar_lea.vmem %s539_s3, 256 }
  0x47   : > { %p541_p12 = scmp.lt.s32.totalorder %s772_s26, %s539_s3  ;;  %p542_p7 = scmp.lt.s32.totalorder %s540_s4, %s534_s25 }
  0x48   : > { %p537_p1 = pneg %p536_p4 }
  0x49   : > { %p543_p8 = por %p542_p7, %p541_p12 }
  0x4b   : > { %p544_p9 = pnand %p543_p8, %p537_p1 }
 0x104   : > { %v265_v4 = vpop.f32.mrf.mxu0 }
 0x105   : > { %270 = vst.msk [vmem:[%s190_s20] sm:$0xff] %vm269_vm2, %v265_v4 }
 0x106   : > { %v402_v5 = vpop.f32.mrf.mxu0 }
 0x107   : > { %547 = shalt.err (!%p544_p9)
}
 0x108   : > { %s548_s6 = scalar_lea.hbm %s770_s24, 128  ;;  %s552_s29 = scalar_lea.hbm %s820_s2, 256 }
 0x109   : > { %p549_p0 = scmp.ne.s32.totalorder %s770_s24, %s548_s6  ;;  %p553_p10 = scmp.lt.s32.totalorder %s770_s24, %s820_s2 }
 0x10a   : > { %p554_p11 = scmp.lt.s32.totalorder %s552_s29, %s548_s6 }
 0x10b   : > { %p550_p2 = pnand %p549_p0, %p832_p13 }
 0x10c   : > { %p555_p5 = por %p554_p11, %p553_p10 }
 0x10d   : > { %p551_p6 = pneg %p550_p2 }
 0x10f   : > { %p556_p3 = pnand %p555_p5, %p551_p6 }
 0x111   : > { %559 = shalt.err (!%p556_p3)
}
 0x112   : > { %409 = dma.vmem_to_hbm [thread:$0]  (%p832_p13), %s772_s26, 128, %s770_s24, %s272_s30  }
 0x113 PF: > { %s297_s15 = sand.u32 1, %s598_s9   ;;  %p833_p4 = scmp.ne.s32.totalorder %s827_s22, 0 }
 0x114   : > { %p834_p1 = scmp.ge.s32.totalorder %s618_s14, 2  ;;  %s298_s18 = scalar_lea.sflag [#allocation4], %s297_s15 }
 0x116   : > { %p420_p12 = pnand %p834_p1, %p833_p4 }
 0x118   : > { %p421_p7 = pneg %p420_p12 }
 0x11a   : > { %593 = dma.done.wait (%p421_p7), %s298_s18, 128  }
 0x11b   : > { %595 = vsyncadd (%p421_p7), %s298_s18, 4294967168  ;;  %s19_s14 = sadd.s32 1, %s618_s14   ;;  %s835_s9 = smov %s602_s10 }
 0x11c   : > { %p16_p8 = scmp.ge.s32.totalorder %s19_s14, 4   ;;  %s836_s10 = smov %s606_s11 }
 0x11d   : > { %s837_s11 = smov %s744_s27  ;;  %s838_s12 = smov %s614_s13 }
 0x11e   : > { %s839_s13 = smov %s841_s28  ;;  %18 = sbr.rel (!%p16_p8) target bundleno = 7 (0x7), region = 78 }
 0x123   :  { %303 = vsyncpa [#allocation3], 1 }
 0x124   :  { %305 = vsyncpa [#allocation3 + $0x1], 1 }
 0x125   :  { %306 = vsyncpa [#allocation6], 1 }
 0x126   :  { %308 = vsyncpa [#allocation6 + $0x1], 1 }
 0x127   :  { %309 = vsyncpa [#allocation4], 1 }
 0x128   :  { %311 = vsyncpa [#allocation4 + $0x1], 1 }

</bundles_post_ra>
